<compile_context>
chip_gen: v5e
topology: v5e:2x2
jax: 0.10.0
libtpu: 0.0.40
codegen_flags: <defaults>
</compile_context>

<pallas_src>
import functools
import math

import jax
import jax.numpy as jnp
from jax.experimental import pallas as pl
from jax.experimental.pallas import tpu as pltpu


_TM_TARGET = 512
_TN_TARGET = 512
_TK_TARGET = 1024
_VMEM_LIMIT_BYTES = 48 * 1024 * 1024   # headroom under v7x's 64 MiB physical VMEM


# ----------------------------- helpers --------------------------------------

def _round_up(n, m):
    return ((n + m - 1) // m) * m


def _pick_tile(dim, target):
    """Largest 128-aligned tile <= target that evenly divides `dim`; falls back
    to the full extent (always legal; the ragged M dim is padded by callers so
    this fallback only ever triggers for small dims)."""
    if dim % target == 0:
        return target
    t = (target // 128) * 128
    while t >= 128:
        if dim % t == 0:
            return t
        t -= 128
    return dim


def _largest_divisor_le(n, cap):
    for g in range(min(n, cap), 0, -1):
        if n % g == 0:
            return g
    return 1


def _pad_rows(x2d, tm_target):
    """Pad the row (M = B*L) dim to an 8- (small M) or 128- (large M) multiple
    so BlockSpecs never fall back to a huge full-extent row block."""
    M = x2d.shape[0]
    align = 8 if M < tm_target else 128
    Mp = _round_up(M, align)
    if Mp != M:
        x2d = jnp.pad(x2d, ((0, Mp - M), (0, 0)))
    return x2d, Mp


def _pick_head_group(H, L, group_target):
    """Heads processed per attention grid step.  When L is 128-aligned the
    per-group output slab (F, G*L) stays lane-dense for any divisor G of H;
    otherwise the block must span the full H*L lane extent (G == H)."""
    if L % 128 != 0:
        return H
    return _largest_divisor_le(H, group_target)


# ----------------------------- GEMM kernel -----------------------------------

def _matmul_bias_kernel(x_ref, w_ref, b_ref, o_ref, acc_ref):
    """o = x @ w + b with f32 accumulation over the K grid axis (axis 2)."""
    @pl.when(pl.program_id(2) == 0)
    def _():
        acc_ref[...] = jnp.zeros_like(acc_ref)

    acc_ref[...] += jnp.dot(x_ref[...], w_ref[...],
                            preferred_element_type=jnp.float32)

    @pl.when(pl.program_id(2) == pl.num_programs(2) - 1)
    def _():
        o_ref[...] = (acc_ref[...] + b_ref[...]).astype(o_ref.dtype)


def pallas_linear(x2d, w_kn, b, *, tm_target=_TM_TARGET, tn_target=_TN_TARGET,
                  tk_target=_TK_TARGET):
    """y = x2d @ w_kn + b, w_kn already (in_features, out_features)."""
    M, K = x2d.shape
    K2, N = w_kn.shape
    assert K == K2, (K, K2)

    x2d, Mp = _pad_rows(x2d, tm_target)
    tm = _pick_tile(Mp, tm_target)
    tn = _pick_tile(N, tn_target)
    tk = _pick_tile(K, tk_target)
    grid = (Mp // tm, N // tn, K // tk)
    b2 = b.reshape(1, N)

    out = pl.pallas_call(
        _matmul_bias_kernel,
        out_shape=jax.ShapeDtypeStruct((Mp, N), x2d.dtype),
        grid_spec=pltpu.PrefetchScalarGridSpec(
            num_scalar_prefetch=0,
            grid=grid,
            in_specs=[
                pl.BlockSpec((tm, tk), lambda i, j, k: (i, k)),
                pl.BlockSpec((tk, tn), lambda i, j, k: (k, j)),
                pl.BlockSpec((1, tn), lambda i, j, k: (0, j)),
            ],
            out_specs=pl.BlockSpec((tm, tn), lambda i, j, k: (i, j)),
            scratch_shapes=[pltpu.VMEM((tm, tn), jnp.float32)],
        ),
        compiler_params=pltpu.CompilerParams(
            dimension_semantics=("parallel", "parallel", "arbitrary"),
            vmem_limit_bytes=_VMEM_LIMIT_BYTES),
    )(x2d, w_kn, b2)

    if Mp != M:
        out = out[:M]
    return out


def pallas_qkv_proj(x2d, w3, b3, *, tm_target=_TM_TARGET, tk_target=_TK_TARGET):
    """Fused per-(qkv, head) projection.

    x2d: (Mp, K) activations (rows already 8/128-padded).
    w3 : (3*H, K, F) pre-packed weights, b3: (3*H, 1, F) biases.
    Returns (3*H, Mp, F): q heads at c in [0,H), k in [H,2H), v in [2H,3H) --
    exactly the layout the attention kernel's BlockSpecs index into.
    """
    Mp, K = x2d.shape
    C, K2, Fd = w3.shape
    assert K == K2, (K, K2)

    tm = _pick_tile(Mp, tm_target)
    tk = _pick_tile(K, tk_target)
    grid = (C, Mp // tm, K // tk)

    return pl.pallas_call(
        _matmul_bias_kernel,
        out_shape=jax.ShapeDtypeStruct((C, Mp, Fd), x2d.dtype),
        grid_spec=pltpu.PrefetchScalarGridSpec(
            num_scalar_prefetch=0,
            grid=grid,
            in_specs=[
                pl.BlockSpec((tm, tk), lambda c, i, k: (i, k)),
                pl.BlockSpec((None, tk, Fd), lambda c, i, k: (c, k, 0)),
                pl.BlockSpec((None, 1, Fd), lambda c, i, k: (c, 0, 0)),
            ],
            out_specs=pl.BlockSpec((None, tm, Fd), lambda c, i, k: (c, i, 0)),
            scratch_shapes=[pltpu.VMEM((tm, Fd), jnp.float32)],
        ),
        compiler_params=pltpu.CompilerParams(
            dimension_semantics=("parallel", "parallel", "arbitrary"),
            vmem_limit_bytes=_VMEM_LIMIT_BYTES),
    )(x2d, w3, b3)


# ----------------------------- Attention kernel -------------------------------

def _attn_kernel(q_ref, k_ref, v_ref, o_ref, *, scale):
    """q/k/v blocks: (G, L, F) per head; output block: (F, G*L), head h written
    at lane offset h*L (so the HBM buffer is already in (B, F, H, L) order)."""
    G, L, _ = q_ref.shape
    for h in range(G):                       # static unroll, G <= group_target
        qh = q_ref[h] * scale                # (L, F) -- q pre-scaled (cheaper
        kh = k_ref[h]                        #           than scaling (F,F) scores)
        vh = v_ref[h]                        # (L, F)

        # att[f, g] = sum_l q[l, f] * k[l, g]
        att = jnp.dot(qh.T, kh, preferred_element_type=jnp.float32)   # (F, F)
        att = att - jnp.max(att, axis=-1, keepdims=True)
        p = jnp.exp(att)
        p = p * pl.reciprocal(jnp.sum(p, axis=-1, keepdims=True), approx=True)

        # y[f, l] = sum_g p[f, g] * v[l, g]
        yh = jnp.dot(p, vh.T, preferred_element_type=jnp.float32)     # (F, L)
        o_ref[:, h * L:(h + 1) * L] = yh.astype(o_ref.dtype)


def pallas_attention(qkv, *, B, L, H, Fd, scale, out_dtype, group_target=4):
    """qkv: (3*H, Mp, F) fused projection output (Mp >= B*L).
    Returns (B, F, H*L) which is a free reshape away from the (B*L, F*H)
    matrix the output projection consumes."""
    G = _pick_head_group(H, L, group_target)
    HG = H // G
    kern = functools.partial(_attn_kernel, scale=scale)

    return pl.pallas_call(
        kern,
        out_shape=jax.ShapeDtypeStruct((B, Fd, H * L), out_dtype),
        grid=(B, HG),
        in_specs=[
            pl.BlockSpec((G, L, Fd), lambda b, hg: (hg, b, 0)),            # q heads
            pl.BlockSpec((G, L, Fd), lambda b, hg: (HG + hg, b, 0)),       # k heads
            pl.BlockSpec((G, L, Fd), lambda b, hg: (2 * HG + hg, b, 0)),   # v heads
        ],
        out_specs=pl.BlockSpec((None, Fd, G * L), lambda b, hg: (b, 0, hg)),
        compiler_params=pltpu.CompilerParams(
            dimension_semantics=("parallel", "parallel"),
            vmem_limit_bytes=_VMEM_LIMIT_BYTES),
    )(qkv, qkv, qkv)


# ----------------------------- Module wrapper --------------------------------

def prepare_params(params, n_heads):
    """One-time (outside jit) weight prep: transpose PyTorch (out, in) weights,
    split the F*H output columns per head (torch views them as (F, H)), and
    pack q|k|v into a single (3*H, K, F) slab + (3*H, 1, F) bias."""
    H = n_heads

    def split_w(w_torch):                       # (F*H, K) -> (H, K, F)
        wt = w_torch.T                          # (K, F*H), col = f*H + h
        K, FH = wt.shape
        Fd = FH // H
        return wt.reshape(K, Fd, H).transpose(2, 0, 1)

    def split_b(b):                             # (F*H,) -> (H, 1, F)
        Fd = b.shape[0] // H
        return b.reshape(Fd, H).transpose(1, 0)[:, None, :]

    Wqkv = jnp.concatenate(
        [split_w(params["Wq"]), split_w(params["Wk"]), split_w(params["Wv"])],
        axis=0)                                                 # (3H, K, F)
    bqkv = jnp.concatenate(
        [split_b(params["bq"]), split_b(params["bk"]), split_b(params["bv"])],
        axis=0)                                                 # (3H, 1, F)
    return {
        "Wqkv": Wqkv,
        "bqkv": bqkv,
        "Wp_t": params["Wp"].T,                                 # (F*H, F)
        "bp": params["bp"],
    }


def multi_head_attention(x, prep, n_heads):
    B, L, Fd = x.shape
    H = n_heads

    x2d = x.reshape(B * L, Fd)
    x2d_p, _ = _pad_rows(x2d, _TM_TARGET)

    # Fused Q/K/V projection: output already in per-(qkv, head) (L, F) slabs.
    qkv = pallas_qkv_proj(x2d_p, prep["Wqkv"], prep["bqkv"])    # (3H, Mp, F)

    # NOTE: PyTorch module scales by 1/sqrt(k.size(-1)) == 1/sqrt(L), not
    # 1/sqrt(d_head).  Intentionally reproduced.
    scale = 1.0 / math.sqrt(L)
    y = pallas_attention(qkv, B=B, L=L, H=H, Fd=Fd, scale=scale,
                         out_dtype=x.dtype)                     # (B, F, H*L)

    # Free reshape: (B, F, H*L) row-major == torch's
    # y.transpose(1, 2).contiguous().view(B, L, F*H).
    y2d = y.reshape(B * L, Fd * H)

    out = pallas_linear(y2d, prep["Wp_t"], prep["bp"])          # (B*L, F)
    return out.reshape(B, L, Fd)


# ----------------------------- Pure-JAX reference ----------------------------

def reference(x, params, n_heads):
    B, L, Fd = x.shape
    H = n_heads
    lin = lambda a, W, b: a @ W.T + b
    k = lin(x, params["Wk"], params["bk"]).reshape(B, L, Fd, H).transpose(0, 3, 2, 1)
    q = lin(x, params["Wq"], params["bq"]).reshape(B, L, Fd, H).transpose(0, 3, 2, 1)
    v = lin(x, params["Wv"], params["bv"]).reshape(B, L, Fd, H).transpose(0, 3, 2, 1)
    att = jnp.matmul(q, jnp.swapaxes(k, -2, -1)) * (1.0 / math.sqrt(L))
    att = jax.nn.softmax(att, axis=-1)
    y = jnp.matmul(att, v)
    y = y.transpose(0, 2, 1, 3).reshape(B, L, Fd * H)
    return lin(y, params["Wp"], params["bp"])


# ----------------------------------- Main ------------------------------------

if __name__ == "__main__":
    B, L, n_embd, n_heads = 2, 8, 16, 4
    key = jax.random.PRNGKey(0)
    ks = jax.random.split(key, 9)

    def init_w(k, shape):
        fan_in = shape[-1]
        return jax.random.normal(k, shape, jnp.float32) / math.sqrt(fan_in)

    params = {
        "Wk": init_w(ks[0], (n_embd * n_heads, n_embd)),
        "bk": 0.01 * jax.random.normal(ks[1], (n_embd * n_heads,), jnp.float32),
        "Wq": init_w(ks[2], (n_embd * n_heads, n_embd)),
        "bq": 0.01 * jax.random.normal(ks[3], (n_embd * n_heads,), jnp.float32),
        "Wv": init_w(ks[4], (n_embd * n_heads, n_embd)),
        "bv": 0.01 * jax.random.normal(ks[5], (n_embd * n_heads,), jnp.float32),
        "Wp": init_w(ks[6], (n_embd, n_embd * n_heads)),
        "bp": 0.01 * jax.random.normal(ks[7], (n_embd,), jnp.float32),
    }
    x = jax.random.normal(ks[8], (B, L, n_embd), jnp.float32)

    prep = prepare_params(params, n_heads)   # one-time weight packing (outside jit)

    fwd = jax.jit(lambda xx, pp: multi_head_attention(xx, pp, n_heads))
    out = jax.block_until_ready(fwd(x, prep))

    ref = reference(x, params, n_heads)
    assert out.shape == (B, L, n_embd), out.shape
    # Tolerance allows for the EUP approximate reciprocal in the softmax
    # denominator (everything else is exact f32 math).
    err = float(jnp.max(jnp.abs(out - ref)))
    assert err < 5e-3, f"max abs error {err}"

    print("KERNEL_OK")
</pallas_src>

<mosaic_0001>
module attributes {stable_mosaic.version = 11 : i64} {
  func.func @_matmul_bias_kernel(%arg0: i32, %arg1: i32, %arg2: i32, %arg3: memref<16x16xf32, #tpu.memory_space<vmem>>, %arg4: memref<1x16x16xf32, #tpu.memory_space<vmem>>, %arg5: memref<1x1x16xf32, #tpu.memory_space<vmem>>, %arg6: memref<1x16x16xf32, #tpu.memory_space<vmem>>, %arg7: memref<16x16xf32, #tpu.memory_space<vmem>>) attributes {dimension_semantics = [#tpu.dimension_semantics<parallel>, #tpu.dimension_semantics<parallel>, #tpu.dimension_semantics<arbitrary>], iteration_bounds = array<i64: 12, 1, 1>, scalar_prefetch = 0 : i64, scratch_operands = 1 : i64, tpu.core_type = #tpu.core_type<tc>, window_params = [{transform_indices = @transform_0, window_bounds = array<i64: 16, 16>}, {transform_indices = @transform_1, window_bounds = array<i64: 1, 16, 16>}, {transform_indices = @transform_2, window_bounds = array<i64: 1, 1, 16>}, {transform_indices = @transform_3, window_bounds = array<i64: 1, 16, 16>}]} {
    %c0_i32 = arith.constant 0 : i32
    %0 = arith.cmpi eq, %arg2, %c0_i32 : i32
    %1 = arith.extui %0 : i1 to i32
    %c0_i32_0 = arith.constant 0 : i32
    %2 = arith.cmpi ne, %1, %c0_i32_0 : i32
    scf.if %2 {
      %cst_11 = arith.constant 0.000000e+00 : f32
      %13 = vector.broadcast %cst_11 : f32 to vector<16x16xf32>
      %c0_12 = arith.constant 0 : index
      %c0_13 = arith.constant 0 : index
      %14 = vector.load %arg7[%c0_12, %c0_13] : memref<16x16xf32, #tpu.memory_space<vmem>>, vector<16x16xf32>
      tpu.vector_store %arg7[%c0_12, %c0_13], %13 {strides = array<i32>} : memref<16x16xf32, #tpu.memory_space<vmem>>, vector<16x16xf32>,
    } else {
    }
    %c0 = arith.constant 0 : index
    %c0_1 = arith.constant 0 : index
    %3 = vector.load %arg7[%c0, %c0_1] : memref<16x16xf32, #tpu.memory_space<vmem>>, vector<16x16xf32>
    %c0_2 = arith.constant 0 : index
    %c0_3 = arith.constant 0 : index
    %4 = vector.load %arg3[%c0_2, %c0_3] : memref<16x16xf32, #tpu.memory_space<vmem>>, vector<16x16xf32>
    %c0_4 = arith.constant 0 : index
    %c0_5 = arith.constant 0 : index
    %c0_6 = arith.constant 0 : index
    %5 = vector.load %arg4[%c0_4, %c0_5, %c0_6] : memref<1x16x16xf32, #tpu.memory_space<vmem>>, vector<1x16x16xf32>
    %6 = vector.shape_cast %5 : vector<1x16x16xf32> to vector<16x16xf32>
    %cst = arith.constant dense<0.000000e+00> : vector<16x16xf32>
    %7 = tpu.matmul %4, %6, %cst {dimension_numbers = #tpu.dot_dimension_numbers<[1], [0], [0], [1], [0, 0, 1, 1], [], []>} : vector<16x16xf32>, vector<16x16xf32>, vector<16x16xf32> -> vector<16x16xf32>
    %8 = arith.addf %3, %7 : vector<16x16xf32>
    %c0_7 = arith.constant 0 : index
    %c0_8 = arith.constant 0 : index
    %9 = vector.load %arg7[%c0_7, %c0_8] : memref<16x16xf32, #tpu.memory_space<vmem>>, vector<16x16xf32>
    tpu.vector_store %arg7[%c0_7, %c0_8], %8 {strides = array<i32>} : memref<16x16xf32, #tpu.memory_space<vmem>>, vector<16x16xf32>,
    %c0_i32_9 = arith.constant 0 : i32
    %10 = arith.cmpi eq, %arg2, %c0_i32_9 : i32
    %11 = arith.extui %10 : i1 to i32
    %c0_i32_10 = arith.constant 0 : i32
    %12 = arith.cmpi ne, %11, %c0_i32_10 : i32
    scf.if %12 {
      %c0_11 = arith.constant 0 : index
      %c0_12 = arith.constant 0 : index
      %13 = vector.load %arg7[%c0_11, %c0_12] : memref<16x16xf32, #tpu.memory_space<vmem>>, vector<16x16xf32>
      %c0_13 = arith.constant 0 : index
      %c0_14 = arith.constant 0 : index
      %c0_15 = arith.constant 0 : index
      %14 = vector.load %arg5[%c0_13, %c0_14, %c0_15] : memref<1x1x16xf32, #tpu.memory_space<vmem>>, vector<1x1x16xf32>
      %15 = vector.shape_cast %14 : vector<1x1x16xf32> to vector<1x16xf32>
      %16 = vector.broadcast %15 : vector<1x16xf32> to vector<16x16xf32>
      %17 = arith.addf %13, %16 : vector<16x16xf32>
      %c0_16 = arith.constant 0 : index
      %c0_17 = arith.constant 0 : index
      %c0_18 = arith.constant 0 : index
      %18 = vector.load %arg6[%c0_16, %c0_17, %c0_18] : memref<1x16x16xf32, #tpu.memory_space<vmem>>, vector<1x16x16xf32>
      %19 = vector.shape_cast %18 : vector<1x16x16xf32> to vector<16x16xf32>
      %20 = vector.shape_cast %17 : vector<16x16xf32> to vector<1x16x16xf32>
      tpu.vector_store %arg6[%c0_16, %c0_17, %c0_18], %20 {strides = array<i32>} : memref<1x16x16xf32, #tpu.memory_space<vmem>>, vector<1x16x16xf32>,
    } else {
    }
    return
  }
  func.func @transform_0(%arg0: i32, %arg1: i32, %arg2: i32) -> (i32, i32) {
    %c0_i32 = arith.constant 0 : i32
    return %arg1, %arg2 : i32, i32
  }
  func.func @transform_1(%arg0: i32, %arg1: i32, %arg2: i32) -> (i32, i32, i32) {
    %c0_i32 = arith.constant 0 : i32
    %c0_i32_0 = arith.constant 0 : i32
    return %arg0, %arg2, %c0_i32 : i32, i32, i32
  }
  func.func @transform_2(%arg0: i32, %arg1: i32, %arg2: i32) -> (i32, i32, i32) {
    %c0_i32 = arith.constant 0 : i32
    %c0_i32_0 = arith.constant 0 : i32
    %c0_i32_1 = arith.constant 0 : i32
    return %arg0, %c0_i32, %c0_i32_0 : i32, i32, i32
  }
  func.func @transform_3(%arg0: i32, %arg1: i32, %arg2: i32) -> (i32, i32, i32) {
    %c0_i32 = arith.constant 0 : i32
    %c0_i32_0 = arith.constant 0 : i32
    return %arg0, %arg1, %c0_i32 : i32, i32, i32
  }
}

module attributes {stable_mosaic.version = 11 : i64} {
  func.func @_matmul_bias_kernel(%arg0: i32, %arg1: i32, %arg2: i32, %arg3: memref<16x64xf32, #tpu.memory_space<vmem>>, %arg4: memref<64x16xf32, #tpu.memory_space<vmem>>, %arg5: memref<1x16xf32, #tpu.memory_space<vmem>>, %arg6: memref<16x16xf32, #tpu.memory_space<vmem>>, %arg7: memref<16x16xf32, #tpu.memory_space<vmem>>) attributes {dimension_semantics = [#tpu.dimension_semantics<parallel>, #tpu.dimension_semantics<parallel>, #tpu.dimension_semantics<arbitrary>], iteration_bounds = array<i64: 1, 1, 1>, scalar_prefetch = 0 : i64, scratch_operands = 1 : i64, tpu.core_type = #tpu.core_type<tc>, window_params = [{transform_indices = @transform_0, window_bounds = array<i64: 16, 64>}, {transform_indices = @transform_1, window_bounds = array<i64: 64, 16>}, {transform_indices = @transform_2, window_bounds = array<i64: 1, 16>}, {transform_indices = @transform_3, window_bounds = array<i64: 16, 16>}]} {
    %c0_i32 = arith.constant 0 : i32
    %0 = arith.cmpi eq, %arg2, %c0_i32 : i32
    %1 = arith.extui %0 : i1 to i32
    %c0_i32_0 = arith.constant 0 : i32
    %2 = arith.cmpi ne, %1, %c0_i32_0 : i32
    scf.if %2 {
      %cst_10 = arith.constant 0.000000e+00 : f32
      %12 = vector.broadcast %cst_10 : f32 to vector<16x16xf32>
      %c0_11 = arith.constant 0 : index
      %c0_12 = arith.constant 0 : index
      %13 = vector.load %arg7[%c0_11, %c0_12] : memref<16x16xf32, #tpu.memory_space<vmem>>, vector<16x16xf32>
      tpu.vector_store %arg7[%c0_11, %c0_12], %12 {strides = array<i32>} : memref<16x16xf32, #tpu.memory_space<vmem>>, vector<16x16xf32>,
    } else {
    }
    %c0 = arith.constant 0 : index
    %c0_1 = arith.constant 0 : index
    %3 = vector.load %arg7[%c0, %c0_1] : memref<16x16xf32, #tpu.memory_space<vmem>>, vector<16x16xf32>
    %c0_2 = arith.constant 0 : index
    %c0_3 = arith.constant 0 : index
    %4 = vector.load %arg3[%c0_2, %c0_3] : memref<16x64xf32, #tpu.memory_space<vmem>>, vector<16x64xf32>
    %c0_4 = arith.constant 0 : index
    %c0_5 = arith.constant 0 : index
    %5 = vector.load %arg4[%c0_4, %c0_5] : memref<64x16xf32, #tpu.memory_space<vmem>>, vector<64x16xf32>
    %cst = arith.constant dense<0.000000e+00> : vector<16x16xf32>
    %6 = tpu.matmul %4, %5, %cst {dimension_numbers = #tpu.dot_dimension_numbers<[1], [0], [0], [1], [0, 0, 1, 1], [], []>} : vector<16x64xf32>, vector<64x16xf32>, vector<16x16xf32> -> vector<16x16xf32>
    %7 = arith.addf %3, %6 : vector<16x16xf32>
    %c0_6 = arith.constant 0 : index
    %c0_7 = arith.constant 0 : index
    %8 = vector.load %arg7[%c0_6, %c0_7] : memref<16x16xf32, #tpu.memory_space<vmem>>, vector<16x16xf32>
    tpu.vector_store %arg7[%c0_6, %c0_7], %7 {strides = array<i32>} : memref<16x16xf32, #tpu.memory_space<vmem>>, vector<16x16xf32>,
    %c0_i32_8 = arith.constant 0 : i32
    %9 = arith.cmpi eq, %arg2, %c0_i32_8 : i32
    %10 = arith.extui %9 : i1 to i32
    %c0_i32_9 = arith.constant 0 : i32
    %11 = arith.cmpi ne, %10, %c0_i32_9 : i32
    scf.if %11 {
      %c0_10 = arith.constant 0 : index
      %c0_11 = arith.constant 0 : index
      %12 = vector.load %arg7[%c0_10, %c0_11] : memref<16x16xf32, #tpu.memory_space<vmem>>, vector<16x16xf32>
      %c0_12 = arith.constant 0 : index
      %c0_13 = arith.constant 0 : index
      %13 = vector.load %arg5[%c0_12, %c0_13] : memref<1x16xf32, #tpu.memory_space<vmem>>, vector<1x16xf32>
      %14 = vector.broadcast %13 : vector<1x16xf32> to vector<16x16xf32>
      %15 = arith.addf %12, %14 : vector<16x16xf32>
      %c0_14 = arith.constant 0 : index
      %c0_15 = arith.constant 0 : index
      %16 = vector.load %arg6[%c0_14, %c0_15] : memref<16x16xf32, #tpu.memory_space<vmem>>, vector<16x16xf32>
      tpu.vector_store %arg6[%c0_14, %c0_15], %15 {strides = array<i32>} : memref<16x16xf32, #tpu.memory_space<vmem>>, vector<16x16xf32>,
    } else {
    }
    return
  }
  func.func @transform_0(%arg0: i32, %arg1: i32, %arg2: i32) -> (i32, i32) {
    %c0_i32 = arith.constant 0 : i32
    return %arg0, %arg2 : i32, i32
  }
  func.func @transform_1(%arg0: i32, %arg1: i32, %arg2: i32) -> (i32, i32) {
    %c0_i32 = arith.constant 0 : i32
    return %arg2, %arg1 : i32, i32
  }
  func.func @transform_2(%arg0: i32, %arg1: i32, %arg2: i32) -> (i32, i32) {
    %c0_i32 = arith.constant 0 : i32
    %c0_i32_0 = arith.constant 0 : i32
    return %c0_i32, %arg1 : i32, i32
  }
  func.func @transform_3(%arg0: i32, %arg1: i32, %arg2: i32) -> (i32, i32) {
    %c0_i32 = arith.constant 0 : i32
    return %arg0, %arg1 : i32, i32
  }
}

module attributes {stable_mosaic.version = 11 : i64} {
  func.func @_attn_kernel(%arg0: i32, %arg1: i32, %arg2: memref<4x8x16xf32, #tpu.memory_space<vmem>>, %arg3: memref<4x8x16xf32, #tpu.memory_space<vmem>>, %arg4: memref<4x8x16xf32, #tpu.memory_space<vmem>>, %arg5: memref<1x16x32xf32, #tpu.memory_space<vmem>>) attributes {dimension_semantics = [#tpu.dimension_semantics<parallel>, #tpu.dimension_semantics<parallel>], iteration_bounds = array<i64: 2, 1>, scalar_prefetch = 0 : i64, scratch_operands = 0 : i64, tpu.core_type = #tpu.core_type<tc>, window_params = [{transform_indices = @transform_0, window_bounds = array<i64: 4, 8, 16>}, {transform_indices = @transform_1, window_bounds = array<i64: 4, 8, 16>}, {transform_indices = @transform_2, window_bounds = array<i64: 4, 8, 16>}, {transform_indices = @transform_3, window_bounds = array<i64: 1, 16, 32>}]} {
    %c0 = arith.constant 0 : index
    %c0_0 = arith.constant 0 : index
    %c0_1 = arith.constant 0 : index
    %0 = vector.load %arg2[%c0, %c0_0, %c0_1] : memref<4x8x16xf32, #tpu.memory_space<vmem>>, vector<1x8x16xf32>
    %1 = vector.shape_cast %0 : vector<1x8x16xf32> to vector<8x16xf32>
    %cst = arith.constant 0.353553385 : f32
    %2 = vector.broadcast %cst : f32 to vector<8x16xf32>
    %3 = arith.mulf %1, %2 : vector<8x16xf32>
    %c0_2 = arith.constant 0 : index
    %c0_3 = arith.constant 0 : index
    %c0_4 = arith.constant 0 : index
    %4 = vector.load %arg3[%c0_2, %c0_3, %c0_4] : memref<4x8x16xf32, #tpu.memory_space<vmem>>, vector<1x8x16xf32>
    %5 = vector.shape_cast %4 : vector<1x8x16xf32> to vector<8x16xf32>
    %c0_5 = arith.constant 0 : index
    %c0_6 = arith.constant 0 : index
    %c0_7 = arith.constant 0 : index
    %6 = vector.load %arg4[%c0_5, %c0_6, %c0_7] : memref<4x8x16xf32, #tpu.memory_space<vmem>>, vector<1x8x16xf32>
    %7 = vector.shape_cast %6 : vector<1x8x16xf32> to vector<8x16xf32>
    %8 = tpu.transpose %3, [1, 0] : vector<8x16xf32> -> vector<16x8xf32>
    %cst_8 = arith.constant dense<0.000000e+00> : vector<16x16xf32>
    %9 = tpu.matmul %8, %5, %cst_8 {dimension_numbers = #tpu.dot_dimension_numbers<[1], [0], [0], [1], [0, 0, 1, 1], [], []>} : vector<16x8xf32>, vector<8x16xf32>, vector<16x16xf32> -> vector<16x16xf32>
    %cst_9 = arith.constant dense<0xFF800000> : vector<16xf32>
    %10 = vector.multi_reduction <maximumf>, %9, %cst_9 [1] : vector<16x16xf32> to vector<16xf32>
    %11 = vector.shape_cast %10 : vector<16xf32> to vector<16x1xf32>
    %12 = vector.broadcast %11 : vector<16x1xf32> to vector<16x16xf32>
    %13 = arith.subf %9, %12 : vector<16x16xf32>
    %14 = math.exp %13 : vector<16x16xf32>
    %cst_10 = arith.constant dense<0.000000e+00> : vector<16xf32>
    %15 = vector.multi_reduction <add>, %14, %cst_10 [1] : vector<16x16xf32> to vector<16xf32>
    %16 = vector.shape_cast %15 : vector<16xf32> to vector<16x1xf32>
    %17 = tpu.reciprocal %16 {approx = true} : vector<16x1xf32> -> vector<16x1xf32>
    %18 = vector.broadcast %17 : vector<16x1xf32> to vector<16x16xf32>
    %19 = arith.mulf %14, %18 : vector<16x16xf32>
    %20 = tpu.transpose %7, [1, 0] : vector<8x16xf32> -> vector<16x8xf32>
    %cst_11 = arith.constant dense<0.000000e+00> : vector<16x8xf32>
    %21 = tpu.matmul %19, %20, %cst_11 {dimension_numbers = #tpu.dot_dimension_numbers<[1], [0], [0], [1], [0, 0, 1, 1], [], []>} : vector<16x16xf32>, vector<16x8xf32>, vector<16x8xf32> -> vector<16x8xf32>
    %c0_12 = arith.constant 0 : index
    %c0_13 = arith.constant 0 : index
    %c0_14 = arith.constant 0 : index
    %22 = vector.load %arg5[%c0_12, %c0_13, %c0_14] : memref<1x16x32xf32, #tpu.memory_space<vmem>>, vector<1x16x8xf32>
    %23 = vector.shape_cast %22 : vector<1x16x8xf32> to vector<16x8xf32>
    %24 = vector.shape_cast %21 : vector<16x8xf32> to vector<1x16x8xf32>
    tpu.vector_store %arg5[%c0_12, %c0_13, %c0_14], %24 {strides = array<i32>} : memref<1x16x32xf32, #tpu.memory_space<vmem>>, vector<1x16x8xf32>,
    %c1 = arith.constant 1 : index
    %c0_15 = arith.constant 0 : index
    %c0_16 = arith.constant 0 : index
    %25 = vector.load %arg2[%c1, %c0_15, %c0_16] : memref<4x8x16xf32, #tpu.memory_space<vmem>>, vector<1x8x16xf32>
    %26 = vector.shape_cast %25 : vector<1x8x16xf32> to vector<8x16xf32>
    %cst_17 = arith.constant 0.353553385 : f32
    %27 = vector.broadcast %cst_17 : f32 to vector<8x16xf32>
    %28 = arith.mulf %26, %27 : vector<8x16xf32>
    %c1_18 = arith.constant 1 : index
    %c0_19 = arith.constant 0 : index
    %c0_20 = arith.constant 0 : index
    %29 = vector.load %arg3[%c1_18, %c0_19, %c0_20] : memref<4x8x16xf32, #tpu.memory_space<vmem>>, vector<1x8x16xf32>
    %30 = vector.shape_cast %29 : vector<1x8x16xf32> to vector<8x16xf32>
    %c1_21 = arith.constant 1 : index
    %c0_22 = arith.constant 0 : index
    %c0_23 = arith.constant 0 : index
    %31 = vector.load %arg4[%c1_21, %c0_22, %c0_23] : memref<4x8x16xf32, #tpu.memory_space<vmem>>, vector<1x8x16xf32>
    %32 = vector.shape_cast %31 : vector<1x8x16xf32> to vector<8x16xf32>
    %33 = tpu.transpose %28, [1, 0] : vector<8x16xf32> -> vector<16x8xf32>
    %cst_24 = arith.constant dense<0.000000e+00> : vector<16x16xf32>
    %34 = tpu.matmul %33, %30, %cst_24 {dimension_numbers = #tpu.dot_dimension_numbers<[1], [0], [0], [1], [0, 0, 1, 1], [], []>} : vector<16x8xf32>, vector<8x16xf32>, vector<16x16xf32> -> vector<16x16xf32>
    %cst_25 = arith.constant dense<0xFF800000> : vector<16xf32>
    %35 = vector.multi_reduction <maximumf>, %34, %cst_25 [1] : vector<16x16xf32> to vector<16xf32>
    %36 = vector.shape_cast %35 : vector<16xf32> to vector<16x1xf32>
    %37 = vector.broadcast %36 : vector<16x1xf32> to vector<16x16xf32>
    %38 = arith.subf %34, %37 : vector<16x16xf32>
    %39 = math.exp %38 : vector<16x16xf32>
    %cst_26 = arith.constant dense<0.000000e+00> : vector<16xf32>
    %40 = vector.multi_reduction <add>, %39, %cst_26 [1] : vector<16x16xf32> to vector<16xf32>
    %41 = vector.shape_cast %40 : vector<16xf32> to vector<16x1xf32>
    %42 = tpu.reciprocal %41 {approx = true} : vector<16x1xf32> -> vector<16x1xf32>
    %43 = vector.broadcast %42 : vector<16x1xf32> to vector<16x16xf32>
    %44 = arith.mulf %39, %43 : vector<16x16xf32>
    %45 = tpu.transpose %32, [1, 0] : vector<8x16xf32> -> vector<16x8xf32>
    %cst_27 = arith.constant dense<0.000000e+00> : vector<16x8xf32>
    %46 = tpu.matmul %44, %45, %cst_27 {dimension_numbers = #tpu.dot_dimension_numbers<[1], [0], [0], [1], [0, 0, 1, 1], [], []>} : vector<16x16xf32>, vector<16x8xf32>, vector<16x8xf32> -> vector<16x8xf32>
    %c0_28 = arith.constant 0 : index
    %c0_29 = arith.constant 0 : index
    %c8 = arith.constant 8 : index
    %47 = vector.load %arg5[%c0_28, %c0_29, %c8] : memref<1x16x32xf32, #tpu.memory_space<vmem>>, vector<1x16x8xf32>
    %48 = vector.shape_cast %47 : vector<1x16x8xf32> to vector<16x8xf32>
    %49 = vector.shape_cast %46 : vector<16x8xf32> to vector<1x16x8xf32>
    tpu.vector_store %arg5[%c0_28, %c0_29, %c8], %49 {strides = array<i32>} : memref<1x16x32xf32, #tpu.memory_space<vmem>>, vector<1x16x8xf32>,
    %c2 = arith.constant 2 : index
    %c0_30 = arith.constant 0 : index
    %c0_31 = arith.constant 0 : index
    %50 = vector.load %arg2[%c2, %c0_30, %c0_31] : memref<4x8x16xf32, #tpu.memory_space<vmem>>, vector<1x8x16xf32>
    %51 = vector.shape_cast %50 : vector<1x8x16xf32> to vector<8x16xf32>
    %cst_32 = arith.constant 0.353553385 : f32
    %52 = vector.broadcast %cst_32 : f32 to vector<8x16xf32>
    %53 = arith.mulf %51, %52 : vector<8x16xf32>
    %c2_33 = arith.constant 2 : index
    %c0_34 = arith.constant 0 : index
    %c0_35 = arith.constant 0 : index
    %54 = vector.load %arg3[%c2_33, %c0_34, %c0_35] : memref<4x8x16xf32, #tpu.memory_space<vmem>>, vector<1x8x16xf32>
    %55 = vector.shape_cast %54 : vector<1x8x16xf32> to vector<8x16xf32>
    %c2_36 = arith.constant 2 : index
    %c0_37 = arith.constant 0 : index
    %c0_38 = arith.constant 0 : index
    %56 = vector.load %arg4[%c2_36, %c0_37, %c0_38] : memref<4x8x16xf32, #tpu.memory_space<vmem>>, vector<1x8x16xf32>
    %57 = vector.shape_cast %56 : vector<1x8x16xf32> to vector<8x16xf32>
    %58 = tpu.transpose %53, [1, 0] : vector<8x16xf32> -> vector<16x8xf32>
    %cst_39 = arith.constant dense<0.000000e+00> : vector<16x16xf32>
    %59 = tpu.matmul %58, %55, %cst_39 {dimension_numbers = #tpu.dot_dimension_numbers<[1], [0], [0], [1], [0, 0, 1, 1], [], []>} : vector<16x8xf32>, vector<8x16xf32>, vector<16x16xf32> -> vector<16x16xf32>
    %cst_40 = arith.constant dense<0xFF800000> : vector<16xf32>
    %60 = vector.multi_reduction <maximumf>, %59, %cst_40 [1] : vector<16x16xf32> to vector<16xf32>
    %61 = vector.shape_cast %60 : vector<16xf32> to vector<16x1xf32>
    %62 = vector.broadcast %61 : vector<16x1xf32> to vector<16x16xf32>
    %63 = arith.subf %59, %62 : vector<16x16xf32>
    %64 = math.exp %63 : vector<16x16xf32>
    %cst_41 = arith.constant dense<0.000000e+00> : vector<16xf32>
    %65 = vector.multi_reduction <add>, %64, %cst_41 [1] : vector<16x16xf32> to vector<16xf32>
    %66 = vector.shape_cast %65 : vector<16xf32> to vector<16x1xf32>
    %67 = tpu.reciprocal %66 {approx = true} : vector<16x1xf32> -> vector<16x1xf32>
    %68 = vector.broadcast %67 : vector<16x1xf32> to vector<16x16xf32>
    %69 = arith.mulf %64, %68 : vector<16x16xf32>
    %70 = tpu.transpose %57, [1, 0] : vector<8x16xf32> -> vector<16x8xf32>
    %cst_42 = arith.constant dense<0.000000e+00> : vector<16x8xf32>
    %71 = tpu.matmul %69, %70, %cst_42 {dimension_numbers = #tpu.dot_dimension_numbers<[1], [0], [0], [1], [0, 0, 1, 1], [], []>} : vector<16x16xf32>, vector<16x8xf32>, vector<16x8xf32> -> vector<16x8xf32>
    %c0_43 = arith.constant 0 : index
    %c0_44 = arith.constant 0 : index
    %c16 = arith.constant 16 : index
    %72 = vector.load %arg5[%c0_43, %c0_44, %c16] : memref<1x16x32xf32, #tpu.memory_space<vmem>>, vector<1x16x8xf32>
    %73 = vector.shape_cast %72 : vector<1x16x8xf32> to vector<16x8xf32>
    %74 = vector.shape_cast %71 : vector<16x8xf32> to vector<1x16x8xf32>
    tpu.vector_store %arg5[%c0_43, %c0_44, %c16], %74 {strides = array<i32>} : memref<1x16x32xf32, #tpu.memory_space<vmem>>, vector<1x16x8xf32>,
    %c3 = arith.constant 3 : index
    %c0_45 = arith.constant 0 : index
    %c0_46 = arith.constant 0 : index
    %75 = vector.load %arg2[%c3, %c0_45, %c0_46] : memref<4x8x16xf32, #tpu.memory_space<vmem>>, vector<1x8x16xf32>
    %76 = vector.shape_cast %75 : vector<1x8x16xf32> to vector<8x16xf32>
    %cst_47 = arith.constant 0.353553385 : f32
    %77 = vector.broadcast %cst_47 : f32 to vector<8x16xf32>
    %78 = arith.mulf %76, %77 : vector<8x16xf32>
    %c3_48 = arith.constant 3 : index
    %c0_49 = arith.constant 0 : index
    %c0_50 = arith.constant 0 : index
    %79 = vector.load %arg3[%c3_48, %c0_49, %c0_50] : memref<4x8x16xf32, #tpu.memory_space<vmem>>, vector<1x8x16xf32>
    %80 = vector.shape_cast %79 : vector<1x8x16xf32> to vector<8x16xf32>
    %c3_51 = arith.constant 3 : index
    %c0_52 = arith.constant 0 : index
    %c0_53 = arith.constant 0 : index
    %81 = vector.load %arg4[%c3_51, %c0_52, %c0_53] : memref<4x8x16xf32, #tpu.memory_space<vmem>>, vector<1x8x16xf32>
    %82 = vector.shape_cast %81 : vector<1x8x16xf32> to vector<8x16xf32>
    %83 = tpu.transpose %78, [1, 0] : vector<8x16xf32> -> vector<16x8xf32>
    %cst_54 = arith.constant dense<0.000000e+00> : vector<16x16xf32>
    %84 = tpu.matmul %83, %80, %cst_54 {dimension_numbers = #tpu.dot_dimension_numbers<[1], [0], [0], [1], [0, 0, 1, 1], [], []>} : vector<16x8xf32>, vector<8x16xf32>, vector<16x16xf32> -> vector<16x16xf32>
    %cst_55 = arith.constant dense<0xFF800000> : vector<16xf32>
    %85 = vector.multi_reduction <maximumf>, %84, %cst_55 [1] : vector<16x16xf32> to vector<16xf32>
    %86 = vector.shape_cast %85 : vector<16xf32> to vector<16x1xf32>
    %87 = vector.broadcast %86 : vector<16x1xf32> to vector<16x16xf32>
    %88 = arith.subf %84, %87 : vector<16x16xf32>
    %89 = math.exp %88 : vector<16x16xf32>
    %cst_56 = arith.constant dense<0.000000e+00> : vector<16xf32>
    %90 = vector.multi_reduction <add>, %89, %cst_56 [1] : vector<16x16xf32> to vector<16xf32>
    %91 = vector.shape_cast %90 : vector<16xf32> to vector<16x1xf32>
    %92 = tpu.reciprocal %91 {approx = true} : vector<16x1xf32> -> vector<16x1xf32>
    %93 = vector.broadcast %92 : vector<16x1xf32> to vector<16x16xf32>
    %94 = arith.mulf %89, %93 : vector<16x16xf32>
    %95 = tpu.transpose %82, [1, 0] : vector<8x16xf32> -> vector<16x8xf32>
    %cst_57 = arith.constant dense<0.000000e+00> : vector<16x8xf32>
    %96 = tpu.matmul %94, %95, %cst_57 {dimension_numbers = #tpu.dot_dimension_numbers<[1], [0], [0], [1], [0, 0, 1, 1], [], []>} : vector<16x16xf32>, vector<16x8xf32>, vector<16x8xf32> -> vector<16x8xf32>
    %c0_58 = arith.constant 0 : index
    %c0_59 = arith.constant 0 : index
    %c24 = arith.constant 24 : index
    %97 = vector.load %arg5[%c0_58, %c0_59, %c24] : memref<1x16x32xf32, #tpu.memory_space<vmem>>, vector<1x16x8xf32>
    %98 = vector.shape_cast %97 : vector<1x16x8xf32> to vector<16x8xf32>
    %99 = vector.shape_cast %96 : vector<16x8xf32> to vector<1x16x8xf32>
    tpu.vector_store %arg5[%c0_58, %c0_59, %c24], %99 {strides = array<i32>} : memref<1x16x32xf32, #tpu.memory_space<vmem>>, vector<1x16x8xf32>,
    return
  }
  func.func @transform_0(%arg0: i32, %arg1: i32) -> (i32, i32, i32) {
    %c0_i32 = arith.constant 0 : i32
    %c0_i32_0 = arith.constant 0 : i32
    return %arg1, %arg0, %c0_i32 : i32, i32, i32
  }
  func.func @transform_1(%arg0: i32, %arg1: i32) -> (i32, i32, i32) {
    %c1_i32 = arith.constant 1 : i32
    %0 = arith.addi %c1_i32, %arg1 : i32
    %c0_i32 = arith.constant 0 : i32
    %c0_i32_0 = arith.constant 0 : i32
    return %0, %arg0, %c0_i32 : i32, i32, i32
  }
  func.func @transform_2(%arg0: i32, %arg1: i32) -> (i32, i32, i32) {
    %c2_i32 = arith.constant 2 : i32
    %0 = arith.addi %c2_i32, %arg1 : i32
    %c0_i32 = arith.constant 0 : i32
    %c0_i32_0 = arith.constant 0 : i32
    return %0, %arg0, %c0_i32 : i32, i32, i32
  }
  func.func @transform_3(%arg0: i32, %arg1: i32) -> (i32, i32, i32) {
    %c0_i32 = arith.constant 0 : i32
    %c0_i32_0 = arith.constant 0 : i32
    return %arg0, %c0_i32, %arg1 : i32, i32, i32
  }
}

</mosaic_0001>

<bundles_post_ra>
// kernel: _lambda_.3
= control target key start
LH: loop header
LB: loop body
LE: loop exit
PB: predicated region body
PF: predicated region fallthrough
CT: control target
= control target key end

     0   :  { %8 = vsyncpa [#allocation4], 0  ;;  %s884_s0 = inlined_call_operand.hbm [shape: f32[16,16], index: 0, kind: input, shape index: {}]   ;;  %s885_s1 = inlined_call_operand.hbm [shape: f32[12,16,16], index: 1, kind: input, shape index: {}]   ;;  %s886_s2 = inlined_call_operand.hbm [shape: f32[12,1,16], index: 2, kind: input, shape index: {}]   ;;  %s887_s3 = inlined_call_operand.vmem [shape: f32[12,16,16], index: 3, kind: output, shape index: {}]  }
   0x1   :  { %9 = vsyncpa [#allocation6], 0 }
   0x2   :  { %11 = vsyncpa [#allocation6 + $0x1], 0  ;;  %s745_s12 = smov 0   ;;  %s747_s13 = smov 0  }
   0x3   :  { %s749_s14 = smov 0   ;;  %s751_s15 = smov 0  }
   0x4   :  { %s753_s16 = smov 0   ;;  %s755_s17 = smov 0  }
   0x5 LB: > { %s36_s18 = sadd.s32 1, %s715_s16  ;;  %s73_s19 = sadd.s32 1, %s707_s14  ;;  %s719_s17 = sphi %s755_s17, %s17_s17   ;;  %s715_s16 = sphi %s753_s16, %s897_s16   ;;  %s711_s15 = sphi %s751_s15, %s896_s15   ;;  %s707_s14 = sphi %s749_s14, %s895_s14   ;;  %s703_s13 = sphi %s747_s13, %s894_s13   ;;  %s699_s12 = sphi %s745_s12, %s893_s12  }
   0x6   : > { %p38_p0 = scmp.ge.s32.totalorder %s36_s18, 12  ;;  %p80_p1 = scmp.ne.s32.totalorder %s707_s14, %s703_s13 }
   0x7   : > { %p81_p2 = scmp.eq.s32.totalorder %s719_s17, 0  ;;  %p520_p5 = scmp.lt.s32.totalorder %s719_s17, 12 }
   0x8   : > { %s899_s18 = smov (%p38_p0, %s36_s18), 0  ;;  %s182_s22 = sand.u32 1, %s719_s17  }
   0x9   : > { %p782_p3 = por %p81_p2, %p80_p1  ;;  %s68_s21 = ssub.s32 %s715_s16, %s899_s18 }
   0xa   : > { %p71_p4 = scmp.eq.s32.totalorder %s68_s21, 0  ;;  %s184_s23 = sand.u32 1, %s707_s14  }
   0xb   : > { %s484_s25 = sshll.u32 %s184_s23, 4  ;;  %s496_s26 = sshll.u32 %s715_s16, 4 }
   0xc   : > { %s792_s24 = scalar_select %p71_p4, %s707_s14, %s73_s19  }
   0xd   : > { %s193_s29 = scalar_lea.hbm %s885_s1, %s496_s26  ;;  %s186_s30 = scalar_lea.vmem [#allocation5], %s484_s25 }
   0xe   : > { %s196_s4 = sshll.u32 %s186_s30, 4  ;;  %s194_s5 = sshll.u32 %s193_s29, 4  ;;  %s197_s4 = int_to_ptr.vmem [resolvable:$true] %s196_s4  ;;  %s195_s5 = int_to_ptr.hbm [resolvable:$true] %s194_s5 }
   0xf   : > { %p802_p6 = pnand %p520_p5, %p782_p3  ;;  %s183_s7 = scalar_lea.sflag [#allocation6], %s182_s22 }
  0x10   : > { %s721_s8 = smov 128   ;;  %s722_s9 = smov 8  }
  0x11   : > { %515 = dma.hbm_to_vmem [thread:$0]  (!%p802_p6), %s195_s5, 256, %s197_s4, %s183_s7, %s721_s8, %s721_s8, %s722_s9  }
  0x12   : > { %s479_s10 = sadd.s32 4294967295, %s719_s17   ;;  %p86_p7 = scmp.ne.s32.totalorder %s703_s13, %s699_s12 }
  0x13   : > { %p811_p8 = scmp.eq.s32.totalorder %s479_s10, 0  ;;  %p481_p9 = scmp.ge.s32.totalorder %s719_s17, 1 }
  0x14   : > { %p151_p10 = scmp.lt.s32.totalorder %s719_s17, 13  ;;  %s166_s22 = sshll.u32 %s884_s0, 4  ;;  %s167_s22 = int_to_ptr.hbm [resolvable:$true] %s166_s22 }
  0x15   : > { %p819_p11 = por %p811_p8, %p86_p7  ;;  %s723_s25 = smov [#allocation3]  }
  0x16   : > { %p823_p12 = pnand %p481_p9, %p151_p10  ;;  %s168_s26 = sshll.u32 %s723_s25, 4  ;;  %s169_s26 = int_to_ptr.vmem [resolvable:$true] %s168_s26 }
  0x17   : > { %s212_s29 = scalar_lea.hbm %s886_s2, %s715_s16  ;;  %s209_s4 = scalar_lea.vmem [#allocation7], %s184_s23 }
  0x18   : > { %p508_p13 = pneg %p823_p12  ;;  %s214_s30 = sshll.u32 %s212_s29, 4  ;;  %s215_s30 = int_to_ptr.hbm [resolvable:$true] %s214_s30 }
  0x19   : > { %s216_s5 = sshll.u32 %s209_s4, 4  ;;  %225 = sbr.rel (%p823_p12) target bundleno = 179 (0xb3), region = 32  ;;  %s217_s5 = int_to_ptr.vmem [resolvable:$true] %s216_s5 }
  0x1a   : > { %p509_p0 = pnand %p508_p13, %p811_p8 }
  0x1b   : > { %518 = dma.hbm_to_vmem [thread:$0]  (!%p802_p6), %s215_s30, 16, %s217_s5, %s183_s7  }
  0x1c   : > { %511 = dma.hbm_to_vmem [thread:$0]  (!%p509_p0), %s167_s22, 256, %s169_s26, [#allocation4], %s721_s8, %s721_s8, %s722_s9  }
  0x1e   : > { %690 = dma.done.wait (%p811_p8), [#allocation4], 256  }
  0x1f   : > { %692 = vsyncadd (%p811_p8), [#allocation4], 4294967040  ;;  %s232_s21 = sand.u32 1, %s479_s10   ;;  %s234_s12 = sand.u32 1, %s703_s13  }
  0x20   : > { %s489_s23 = sshll.u32 %s234_s12, 4  ;;  %s233_s25 = scalar_lea.sflag [#allocation6], %s232_s21 }
  0x21   : > { %s236_s27 = scalar_lea.vmem [#allocation5], %s489_s23 }
  0x22   : > { %694 = dma.done.wait (%p819_p11), %s233_s25, 272  }
  0x23   : > { %696 = vsyncadd (%p819_p11), %s233_s25, 4294967024  ;;  %vm293_vm0 = vcmask 130048   ;;  %v724_v0 = vmov 0.0   ;;  %v301_v1 = vld [vmem:[%s236_s27 + $0x8] sm:$0xff]  ;;  %v300_v2 = vld [vmem:[%s236_s27] sm:$0xff]  ;;  %s245_s6 = scalar_lea.vmem [#allocation7], %s234_s12 }
  0x24   : > { %294 = vst.msk [vmem:[#allocation2] sm:$0xff] %vm293_vm0, %v724_v0  ;;  %323 = vmatpush.msra.mxu0 %v301_v1  ;;  %498 = vmatpush.msra.mxu1 %v301_v1  ;;  %v298_v3 = vld [vmem:[#allocation3] sm:$0xff]  ;;  %v299_v4 = vld [vmem:[#allocation3 + $0x8] sm:$0xff]  ;;  %p280_p1 = scmp.lt.s32.totalorder %s711_s15, 11  ;;  %v574_v11 = vld [vmem:[%s245_s6] ss:$0 sm:$0xff] }
  0x25   : > { %295 = vst.msk [vmem:[#allocation2 + $0x8] sm:$0xff] %vm293_vm0, %v724_v0 }
  0x26   : > { %324 = vmatpush.msra.mxu0 %v300_v2  ;;  %499 = vmatpush.msra.mxu1 %v300_v2  ;;  %s901_s15 = smov (!%p280_p1, %s711_s15), 11 }
  0x27   : > { %492 = vmatmul.msk.f32.vlgmr.msra.gmra.mxu0 %vm293_vm0, %v298_v3  ;;  %493 = vmatmul.msk.f32.vlgmr.msra.gmra.mxu1 %vm293_vm0, %v299_v4  ;;  %s497_s7 = sshll.u32 %s901_s15, 4 }
  0x28   : > { %s287_s10 = scalar_lea.vmem %s887_s3, %s497_s7 }
  0x2b   : > { %v296_v5 = vld [vmem:[#allocation2] sm:$0xff] }
  0x2c   : > { %v297_v6 = vld [vmem:[#allocation2 + $0x8] sm:$0xff] }
  0xa4   : > { %v326_v7 = vpop.f32.mrf.mxu0  ;;  %v329_v8 = vpop.f32.mrf.mxu1 }
  0xa5   : > { %v332_v9 = vadd.f32 %v326_v7, %v296_v5  ;;  %v333_v10 = vadd.f32 %v329_v8, %v297_v6 }
  0xa7   : > { %334 = vst.msk [vmem:[#allocation2] sm:$0xff] %vm293_vm0, %v332_v9 }
  0xa8   : > { %335 = vst.msk [vmem:[#allocation2 + $0x8] sm:$0xff] %vm293_vm0, %v333_v10 }
  0xae   : > { %v339_v12 = vld [vmem:[#allocation2] sm:$0xff] }
  0xaf   : > { %v345_v13 = vadd.f32 %v574_v11, %v339_v12  ;;  %v340_v14 = vld [vmem:[#allocation2 + $0x8] sm:$0xff] }
  0xb0   : > { %v346_v15 = vadd.f32 %v574_v11, %v340_v14 }
  0xb1   : > { %347 = vst.msk [vmem:[%s287_s10] sm:$0xff] %vm293_vm0, %v345_v13 }
  0xb2   : > { %348 = vst.msk [vmem:[%s287_s10 + $0x8] sm:$0xff] %vm293_vm0, %v346_v15 }
  0xb3 PF: > { %s17_s17 = sadd.s32 1, %s719_s17   ;;  %s893_s12 = smov %s703_s13 }
  0xb4   : > { %p14_p2 = scmp.ge.s32.totalorder %s17_s17, 14   ;;  %s894_s13 = smov %s707_s14 }
  0xb5   : > { %s895_s14 = smov %s792_s24  ;;  %s896_s15 = smov %s715_s16 }
  0xb6   : > { %s897_s16 = smov %s899_s18  ;;  %16 = sbr.rel (!%p14_p2) target bundleno = 5 (0x5), region = 97 }
  0xbb   :  { %379 = vsyncpa [#allocation4], 1 }
  0xbc   :  { %381 = vsyncpa [#allocation4 + $0x1], 1 }
  0xbd   :  { %382 = vsyncpa [#allocation6], 1 }
  0xbe   :  { %384 = vsyncpa [#allocation6 + $0x1], 1 }

// kernel: _lambda_.5
= control target key start
LH: loop header
LB: loop body
LE: loop exit
PB: predicated region body
PF: predicated region fallthrough
CT: control target
= control target key end

     0   :  { %vm19_vm0 = vcmask 130048   ;;  %v141_v2 = vmov 0.0   ;;  %s207_s0 = inlined_call_operand.vmem [shape: f32[16,64], index: 0, kind: input, shape index: {}]   ;;  %s208_s1 = inlined_call_operand.vmem [shape: f32[64,16], index: 1, kind: input, shape index: {}]   ;;  %s209_s2 = inlined_call_operand.vmem [shape: f32[1,16], index: 2, kind: input, shape index: {}]   ;;  %s210_s3 = inlined_call_operand.hbm [shape: f32[16,16], index: 3, kind: output, shape index: {}]  }
   0x1   :  { %v33_v0 = vld [vmem:[%s208_s1 + $0x38] sm:$0xff]  ;;  %v32_v1 = vld [vmem:[%s208_s1 + $0x30] sm:$0xff]  ;;  %20 = vst.msk [vmem:[#allocation2] sm:$0xff] %vm19_vm0, %v141_v2  ;;  %v31_v3 = vld [vmem:[%s208_s1 + $0x28] sm:$0xff] }
   0x2   :  { %49 = vmatpush.msra.mxu0 %v33_v0  ;;  %102 = vmatpush.msra.mxu1 %v33_v0  ;;  %21 = vst.msk [vmem:[#allocation2 + $0x8] sm:$0xff] %vm19_vm0, %v141_v2 }
   0x4   :  { %50 = vmatpush.msra.mxu0 %v32_v1  ;;  %103 = vmatpush.msra.mxu1 %v32_v1 }
   0x5   :  { %8 = vsyncpa [#allocation4], 0  ;;  %v30_v4 = vld [vmem:[%s208_s1 + $0x20] sm:$0xff]  ;;  %v29_v5 = vld [vmem:[%s208_s1 + $0x18] sm:$0xff]  ;;  %vm34_vm1 = vcmask 523264   ;;  %s142_s6 = smov [#allocation3]  }
   0x6   :  { %51 = vmatpush.msra.mxu0 %v31_v3  ;;  %104 = vmatpush.msra.mxu1 %v31_v3  ;;  %v28_v6 = vld [vmem:[%s208_s1 + $0x10] sm:$0xff]  ;;  %v27_v7 = vld [vmem:[%s208_s1 + $0x8] sm:$0xff]  ;;  %v26_v8 = vld [vmem:[%s208_s1] sm:$0xff]  ;;  %s88_s9 = sshll.u32 %s210_s3, 4  ;;  %s143_s10 = smov 128   ;;  %s89_s9 = int_to_ptr.hbm [resolvable:$true] %s88_s9 }
   0x7   :  { %v24_v9 = vld [vmem:[%s207_s0] sm:$0xff]  ;;  %v25_v10 = vld [vmem:[%s207_s0 + $0x8] sm:$0xff]  ;;  %s86_s0 = sshll.u32 %s142_s6, 4  ;;  %s144_s11 = smov 8   ;;  %s87_s0 = int_to_ptr.vmem [resolvable:$true] %s86_s0 }
   0x8   :  { %52 = vmatpush.msra.mxu0 %v30_v4  ;;  %105 = vmatpush.msra.mxu1 %v30_v4  ;;  %v22_v11 = vld [vmem:[#allocation2] sm:$0xff] }
   0x9   :  { %v23_v12 = vld [vmem:[#allocation2 + $0x8] sm:$0xff]  ;;  %v114_v17 = vld [vmem:[%s209_s2] ss:$0 sm:$0xff] }
   0xa   :  { %53 = vmatpush.msra.mxu0 %v29_v5  ;;  %106 = vmatpush.msra.mxu1 %v29_v5 }
   0xc   :  { %54 = vmatpush.msra.mxu0 %v28_v6  ;;  %107 = vmatpush.msra.mxu1 %v28_v6 }
   0xe   :  { %55 = vmatpush.msra.mxu0 %v27_v7  ;;  %108 = vmatpush.msra.mxu1 %v27_v7 }
  0x10   :  { %56 = vmatpush.msra.mxu0 %v26_v8  ;;  %109 = vmatpush.msra.mxu1 %v26_v8 }
  0x11   :  { %100 = vmatmul.msk.f32.vlgmr.msra.gmra.mxu0 %vm34_vm1, %v24_v9  ;;  %101 = vmatmul.msk.f32.vlgmr.msra.gmra.mxu1 %vm34_vm1, %v25_v10 }
  0x8e   :  { %v58_v13 = vpop.f32.mrf.mxu0  ;;  %v61_v14 = vpop.f32.mrf.mxu1 }
  0x8f   :  { %v64_v15 = vadd.f32 %v58_v13, %v22_v11  ;;  %v65_v16 = vadd.f32 %v61_v14, %v23_v12 }
  0x91   :  { %67 = vst.msk [vmem:[#allocation2] sm:$0xff] %vm19_vm0, %v64_v15 }
  0x92   :  { %68 = vst.msk [vmem:[#allocation2 + $0x8] sm:$0xff] %vm19_vm0, %v65_v16 }
  0x98   :  { %v72_v18 = vld [vmem:[#allocation2] sm:$0xff] }
  0x99   :  { %v73_v19 = vld [vmem:[#allocation2 + $0x8] sm:$0xff]  ;;  %v78_v20 = vadd.f32 %v114_v17, %v72_v18 }
  0x9a   :  { %v79_v21 = vadd.f32 %v114_v17, %v73_v19 }
  0x9b   :  { %80 = vst.msk [vmem:[#allocation3] sm:$0xff] %vm19_vm0, %v78_v20 }
  0x9c   :  { %81 = vst.msk [vmem:[#allocation3 + $0x8] sm:$0xff] %vm19_vm0, %v79_v21 }
  0x9d   :  { %94 = dma.vmem_to_hbm [thread:$0]  %s87_s0, 256, %s89_s9, [#allocation4], %s143_s10, %s143_s10, %s144_s11  }
  0x9e   :  { %139 = dma.done.wait [#allocation4], 256  }
  0x9f   :  { %140 = vsyncadd [#allocation4], 4294967040 }
  0xa0   :  { %99 = vsyncpa [#allocation4], 1 }

// kernel: _lambda_.4
= control target key start
LH: loop header
LB: loop body
LE: loop exit
PB: predicated region body
PF: predicated region fallthrough
CT: control target
= control target key end

     0   :  { %s1242_s12 = smov 0   ;;  %s1244_s13 = smov 0   ;;  %s1399_s0 = inlined_call_operand.vmem [shape: f32[12,16,16], index: 0, kind: input, shape index: {}, may-alias: {0,1,2}]   ;;  %s1400_s1 = inlined_call_operand.vmem [shape: f32[12,16,16], index: 1, kind: input, shape index: {}, may-alias: {0,1,2}]   ;;  %s1401_s2 = inlined_call_operand.vmem [shape: f32[12,16,16], index: 2, kind: input, shape index: {}, may-alias: {0,1,2}]   ;;  %s1402_s3 = inlined_call_operand.vmem [shape: f32[2,16,32], index: 3, kind: output, shape index: {}]  }
   0x1   :  { %s1246_s14 = smov 0   ;;  %s1248_s15 = smov 0  }
   0x2   :  { %s1250_s16 = smov 0  }
   0x3 LB: > { %s25_s17 = sadd.s32 1, %s1213_s15  ;;  %p41_p1 = scmp.ne.s32.totalorder %s1205_s13, %s1201_s12  ;;  %s1217_s16 = sphi %s1250_s16, %s13_s16   ;;  %s1213_s15 = sphi %s1248_s15, %s1407_s15   ;;  %s1209_s14 = sphi %s1246_s14, %s1406_s14   ;;  %s1205_s13 = sphi %s1244_s13, %s1405_s13   ;;  %s1201_s12 = sphi %s1242_s12, %s1404_s12  }
   0x4   : > { %p27_p0 = scmp.ge.s32.totalorder %s25_s17, 2  ;;  %p42_p2 = scmp.eq.s32.totalorder %s1217_s16, 0 }
   0x5   : > { %s34_s20 = sadd.s32 1, %s1205_s13  ;;  %p1050_p5 = scmp.ge.s32.totalorder %s1217_s16, 2 }
   0x6   : > { %s1409_s17 = smov (%p27_p0, %s25_s17), 0  ;;  %p1273_p3 = por %p42_p2, %p41_p1 }
   0x7   : > { %s30_s19 = ssub.s32 %s1213_s15, %s1409_s17  ;;  %155 = sbr.rel (%p1050_p5) target bundleno = 36 (0x24), region = 16 }
   0x8   : > { %p32_p4 = scmp.eq.s32.totalorder %s30_s19, 0 }
   0xa   : > { %s1281_s21 = scalar_select %p32_p4, %s1205_s13, %s34_s20  }
   0xc   : > { %158 = sbr.rel (!%p1273_p3) target bundleno = 20 (0x14), region = 20  ;;  %s160_s22 = sand.u32 (%p1273_p3), 1, %s1205_s13  }
   0xd   : > { %s1052_s23 = sshll.u32 (%p1273_p3), %s1213_s15, 3  ;;  %s1051_s24 = sshll.u32 (%p1273_p3), %s160_s22, 5 }
   0xe   : > { %s167_s27 = scalar_lea.vmem (%p1273_p3), %s1399_s0, %s1052_s23  ;;  %s162_s28 = scalar_lea.vmem (%p1273_p3), [#allocation2], %s1051_s24 }
   0xf   : > { %v202_v0 = vld [vmem:[%s167_s27] sm:$0xff] (%p1273_p3)  ;;  %v204_v1 = vld [vmem:[%s167_s27 + $0x10] sm:$0xff] (%p1273_p3) }
  0x10   : > { %v206_v2 = vld [vmem:[%s167_s27 + $0x20] sm:$0xff] (%p1273_p3)  ;;  %203 = vst [vmem:[%s162_s28] sm:$0xff] (%p1273_p3), %v202_v0  ;;  %v208_v3 = vld [vmem:[%s167_s27 + $0x30] sm:$0xff] (%p1273_p3) }
  0x11   : > { %205 = vst [vmem:[%s162_s28 + $0x8] sm:$0xff] %v204_v1 }
  0x12   : > { %207 = vst [vmem:[%s162_s28 + $0x10] sm:$0xff] %v206_v2 }
  0x13   : > { %209 = vst [vmem:[%s162_s28 + $0x18] sm:$0xff] %v208_v3 }
  0x14 PF: > { %215 = sbr.rel (!%p1273_p3) target bundleno = 28 (0x1c), region = 58  ;;  %s217_s29 = sand.u32 (%p1273_p3), 1, %s1205_s13  }
  0x15   : > { %s1054_s30 = sshll.u32 (%p1273_p3), %s1213_s15, 3  ;;  %s1053_s4 = sshll.u32 (%p1273_p3), %s217_s29, 5 }
  0x16   : > { %s958_s7 = scalar_lea.vmem (%p1273_p3), %s1400_s1, %s1054_s30  ;;  %s219_s8 = scalar_lea.vmem (%p1273_p3), [#allocation3], %s1053_s4 }
  0x17   : > { %v1055_v4 = vld [vmem:[%s958_s7 + $0x40] sm:$0xff] (%p1273_p3)  ;;  %v1056_v5 = vld [vmem:[%s958_s7 + $0x50] sm:$0xff] (%p1273_p3) }
  0x18   : > { %v1057_v6 = vld [vmem:[%s958_s7 + $0x60] sm:$0xff] (%p1273_p3)  ;;  %261 = vst [vmem:[%s219_s8] sm:$0xff] (%p1273_p3), %v1055_v4  ;;  %v1058_v7 = vld [vmem:[%s958_s7 + $0x70] sm:$0xff] (%p1273_p3) }
  0x19   : > { %263 = vst [vmem:[%s219_s8 + $0x8] sm:$0xff] %v1056_v5 }
  0x1a   : > { %265 = vst [vmem:[%s219_s8 + $0x10] sm:$0xff] %v1057_v6 }
  0x1b   : > { %267 = vst [vmem:[%s219_s8 + $0x18] sm:$0xff] %v1058_v7 }
  0x1c PF: > { %273 = sbr.rel (!%p1273_p3) target bundleno = 36 (0x24), region = 96  ;;  %s275_s9 = sand.u32 (%p1273_p3), 1, %s1205_s13  }
  0x1d   : > { %s1060_s10 = sshll.u32 (%p1273_p3), %s1213_s15, 3  ;;  %s1059_s11 = sshll.u32 (%p1273_p3), %s275_s9, 5 }
  0x1e   : > { %s965_s22 = scalar_lea.vmem (%p1273_p3), %s1401_s2, %s1060_s10  ;;  %s277_s23 = scalar_lea.vmem (%p1273_p3), [#allocation4], %s1059_s11 }
  0x1f   : > { %v1061_v8 = vld [vmem:[%s965_s22 + $0x80] sm:$0xff] (%p1273_p3)  ;;  %v1062_v9 = vld [vmem:[%s965_s22 + $0x90] sm:$0xff] (%p1273_p3) }
  0x20   : > { %v1063_v10 = vld [vmem:[%s965_s22 + $0xa0] sm:$0xff] (%p1273_p3)  ;;  %319 = vst [vmem:[%s277_s23] sm:$0xff] (%p1273_p3), %v1061_v8  ;;  %v1064_v11 = vld [vmem:[%s965_s22 + $0xb0] sm:$0xff] (%p1273_p3) }
  0x21   : > { %321 = vst [vmem:[%s277_s23 + $0x8] sm:$0xff] %v1062_v9 }
  0x22   : > { %323 = vst [vmem:[%s277_s23 + $0x10] sm:$0xff] %v1063_v10 }
  0x23   : > { %325 = vst [vmem:[%s277_s23 + $0x18] sm:$0xff] %v1064_v11 }
  0x24 PF: > { %p1065_p6 = scmp.ge.s32.totalorder %s1217_s16, 1  ;;  %p330_p7 = scmp.lt.s32.totalorder %s1217_s16, 3 }
  0x26   : > { %p331_p8 = pnand %p1065_p6, %p330_p7 }
  0x27   : > { %s337_s18 = sand.u32 (!%p331_p8), 1, %s1201_s12   ;;  %p390_p9 = scmp.lt.s32.totalorder (!%p331_p8), %s1209_s14, 1 }
  0x28   : > { %334 = sbr.rel (%p331_p8) target bundleno = 1335 (0x537), region = 134  ;;  %s1308_s24 = sshll.u32 (!%p331_p8), %s337_s18, 5 }
  0x29   : > { %s1311_s25 = scalar_lea.vmem (!%p331_p8), [#allocation2], %s1308_s24  ;;  %s1315_s26 = scalar_lea.vmem (!%p331_p8), [#allocation3], %s1308_s24 }
  0x2a   : > { %s1331_s12 = scalar_lea.vmem (!%p331_p8), [#allocation4], %s1308_s24  ;;  %s1220_s4 = smov (!%p331_p8), 16  }
  0x2b   : > { %s1221_s5 = smov (!%p331_p8), 24  }
  0x2d   : > { %v398_v12 = vld [vmem:[%s1311_s25] sm:$0xff]  ;;  %vm434_vm0 = vcmask 64512   ;;  %v1076_v17 = vld [vmem:[%s1311_s25 + $0x8] sm:$0xff]  ;;  %vm464_vm1 = vcmask 130048   ;;  %v1092_v36 = vld [vmem:[%s1311_s25 + $0x18] sm:$0xff]  ;;  %s1411_s14 = smov (!%p390_p9, %s1209_s14), 1 }
  0x2e   : > { %v400_v13 = vld [vmem:[%s1315_s26] sm:$0xff]  ;;  %v399_v14 = vmul.f32 0.35355338, %v398_v12  ;;  %v523_v18 = vmul.f32 0.35355338, %v1076_v17  ;;  %v1077_v33 = vld [vmem:[%s1315_s26 + $0x8] sm:$0xff] }
  0x2f   : > { %456 = vmatpush.msra.mxu0 %v400_v13  ;;  %581 = vmatpush.msra.mxu2 %v1077_v33  ;;  %v789_v37 = vmul.f32 0.35355338, %v1092_v36  ;;  %v1084_v38 = vld [vmem:[%s1311_s25 + $0x10] sm:$0xff]  ;;  %v401_v40 = vld [vmem:[%s1331_s12] sm:$0xff]  ;;  %v1093_v50 = vld [vmem:[%s1315_s26 + $0x18] sm:$0xff]  ;;  %s1102_s27 = sshll.u32 %s1411_s14, 4 }
  0x30   : > { %402 = vxpose.xlu0.b32.start.end [1/1] (short) (narrow) %v399_v14, 16  ;;  %528 = vxpose.xlu2.b32.start.end [1/1] (short) (narrow) %v523_v18, 16  ;;  %v656_v39 = vmul.f32 0.35355338, %v1084_v38  ;;  %v1085_v41 = vld [vmem:[%s1315_s26 + $0x10] sm:$0xff]  ;;  %s1350_s30 = scalar_lea.vmem %s1402_s3, %s1102_s27  ;;  %s1219_s14 = smov 8  }
  0x31   : > { %1073 = vmatpush.xpose.msk.msra.mxu1 %vm464_vm1, %v401_v40  ;;  %714 = vmatpush.msrb.mxu0 %v1085_v41  ;;  %v1086_v40 = vld [vmem:[%s1331_s12 + $0x10] sm:$0xff]  ;;  %v1094_v41 = vld [vmem:[%s1331_s12 + $0x18] sm:$0xff]  ;;  %vm651_vm2 = vcmask 130112   ;;  %vm784_vm3 = vcmask 195712   ;;  %vm917_vm4 = vcmask 261312  }
  0x32   : > { %1089 = vmatpush.xpose.msk.msrb.mxu2 %vm464_vm1, %v1086_v40 }
  0x35   : > { %847 = vmatpush.msrb.mxu1 %v1093_v50 }
  0xc9   : > { %v544_v34 = vpop.trf.xlu2 }
  0xca   : > { %1079 = vmatmul.msk.f32.vlgmr.msra.gmra.mxu2 %vm434_vm0, %v544_v34 }
  0xd1   : > { %v545_v35 = vpop.trf.xlu2 }
  0xd2   : > { %1080 = vmatmul.msk.f32.gmra.mxu2 %vm434_vm0, %v545_v35 }
  0xd4   : > { %v418_v15 = vpop.trf.xlu0 }
  0xd5   : > { %1071 = vmatmul.msk.f32.vlgmr.msra.gmra.mxu0 %vm434_vm0, %v418_v15 }
  0xdc   : > { %v419_v16 = vpop.trf.xlu0 }
  0xdd   : > { %1072 = vmatmul.msk.f32.gmra.mxu0 %vm434_vm0, %v419_v16  ;;  %v1078_v16 = vld [vmem:[%s1331_s12 + $0x8] sm:$0xff] }
  0xde   : > { %1081 = vmatpush.xpose.msk.msra.mxu3 %vm464_vm1, %v1078_v16 }
  0xe2   : > { %1097 = vmatpush.xpose.msk.msrb.mxu3 %vm464_vm1, %v1094_v41 }
 0x14d   : > { %v583_v48 = vpop.f32.mrf.mxu2 }
 0x14e   : > { %v589_v49 = vsel %vm464_vm1, %v583_v48, -inf }
 0x152   : > { %v458_v19 = vpop.f32.mrf.mxu0 }
 0x153   : > { %v465_v20 = vsel %vm464_vm1, %v458_v19, -inf }
 0x154   : > { %466 = vmax.xlane.f32.xlu0 %v465_v20 }
 0x155   : > { %v586_v51 = vpop.f32.mrf.mxu2 }
 0x156   : > { %v592_v52 = vsel %vm464_vm1, %v586_v51, -inf }
 0x15a   : > { %v461_v21 = vpop.f32.mrf.mxu0 }
 0x15b   : > { %v468_v22 = vsel %vm464_vm1, %v461_v21, -inf }
 0x15c   : > { %469 = vmax.xlane.f32.xlu1 %v468_v22 }
 0x1c7   : > { %v467_v23 = vpop.xlane.xlu0 %466 }
 0x1c8   : > { %v471_v24 = vsub.f32 %v458_v19, %v467_v23 }
 0x1ca   : > { %v473_v25 = vmul.f32 1.442695, %v471_v24 }
 0x1cc   : > { %1147 = vpow2.f32 %v473_v25 }
 0x1cf   : > { %v470_v26 = vpop.xlane.xlu1 %469 }
 0x1d0   : > { %v472_v27 = vsub.f32 %v461_v21, %v470_v26 }
 0x1d2   : > { %v1148_v28 = vpop.eup %1147  ;;  %v475_v29 = vmul.f32 1.442695, %v472_v27 }
 0x1d3   : > { %v477_v30 = vsel %vm464_vm1, %v1148_v28, 0.0 }
 0x1d4   : > { %1149 = vpow2.f32 %v475_v29  ;;  %478 = vadd.xlane.f32.xlu1 %v477_v30 }
 0x1da   : > { %v1150_v31 = vpop.eup %1149 }
 0x1db   : > { %v480_v32 = vsel %vm464_vm1, %v1150_v31, 0.0 }
 0x1dc   : > { %481 = vadd.xlane.f32.xlu2 %v480_v32 }
 0x205   : > { %794 = vxpose.xlu2.b32.start.end [1/1] (short) (narrow) %v789_v37, 16 }
 0x20e   : > { %661 = vxpose.xlu1.b32.start.end [1/1] (short) (narrow) %v656_v39, 16 }
 0x247   : > { %v479_v42 = vpop.xlane.xlu1 %478 }
 0x248   : > { %1151 = vrcp.f32 %v479_v42 }
 0x24e   : > { %v1152_v43 = vpop.eup %1151 }
 0x24f   : > { %v482_v44 = vpop.xlane.xlu2 %481  ;;  %v485_v45 = vmul.f32 %v1152_v43, %v1148_v28 }
 0x250   : > { %1153 = vrcp.f32 %v482_v44 }
 0x251   : > { %1074 = vmatmul.msk.f32.vlgmr.msra.gmra.mxu1 %vm464_vm1, %v485_v45 }
 0x256   : > { %v1154_v46 = vpop.eup %1153 }
 0x257   : > { %v486_v47 = vmul.f32 %v1154_v46, %v1150_v31 }
 0x259   : > { %1075 = vmatmul.msk.f32.gmra.mxu1 %vm464_vm1, %v486_v47 }
 0x276   : > { %593 = vmax.xlane.f32.xlu1 %v592_v52 }
 0x27e   : > { %590 = vmax.xlane.f32.xlu2 %v589_v49 }
 0x29e   : > { %v810_v53 = vpop.trf.xlu2 }
 0x29f   : > { %1095 = vmatmul.msk.f32.vlgmr.msrb.gmra.mxu1 %vm434_vm0, %v810_v53 }
 0x2a6   : > { %v811_v54 = vpop.trf.xlu2 }
 0x2a7   : > { %1096 = vmatmul.msk.f32.gmra.mxu1 %vm434_vm0, %v811_v54 }
 0x2b2   : > { %v677_v55 = vpop.trf.xlu1 }
 0x2b3   : > { %1087 = vmatmul.msk.f32.vlgmr.msrb.gmra.mxu0 %vm434_vm0, %v677_v55 }
 0x2ba   : > { %v678_v56 = vpop.trf.xlu1 }
 0x2bb   : > { %1088 = vmatmul.msk.f32.gmra.mxu0 %vm434_vm0, %v678_v56 }
 0x2ce   : > { %v513_v57 = vpop.f32.mrf.mxu1 }
 0x2cf   : > { %519 = vst.msk [vmem:[%s1350_s30] sm:$0xff] %vm434_vm0, %v513_v57 }
 0x2d6   : > { %v516_v58 = vpop.f32.mrf.mxu1 }
 0x2d7   : > { %520 = vst.msk [vmem:[%s1350_s30 + $0x8] sm:$0xff] %vm434_vm0, %v516_v58 }
 0x2e9   : > { %v594_v5 = vpop.xlane.xlu1 %593 }
 0x2ea   : > { %v596_v7 = vsub.f32 %v586_v51, %v594_v5 }
 0x2ec   : > { %v599_v8 = vmul.f32 1.442695, %v596_v7 }
 0x2f1   : > { %v591_v0 = vpop.xlane.xlu2 %590 }
 0x2f2   : > { %v595_v2 = vsub.f32 %v583_v48, %v591_v0 }
 0x2f4   : > { %v597_v3 = vmul.f32 1.442695, %v595_v2 }
 0x2f6   : > { %1155 = vpow2.f32 %v597_v3 }
 0x2f7   : > { %1157 = vpow2.f32 %v599_v8 }
 0x2fc   : > { %v1156_v9 = vpop.eup %1155 }
 0x2fd   : > { %v601_v10 = vsel %vm464_vm1, %v1156_v9, 0.0  ;;  %v1158_v11 = vpop.eup %1157 }
 0x2fe   : > { %v604_v12 = vsel %vm464_vm1, %v1158_v11, 0.0 }
 0x31c   : > { %v849_v63 = vpop.f32.mrf.mxu1 }
 0x31d   : > { %v855_v1 = vsel %vm464_vm1, %v849_v63, -inf }
 0x324   : > { %v852_v4 = vpop.f32.mrf.mxu1 }
 0x325   : > { %v858_v6 = vsel %vm464_vm1, %v852_v4, -inf }
 0x330   : > { %v716_v59 = vpop.f32.mrf.mxu0 }
 0x331   : > { %v722_v60 = vsel %vm464_vm1, %v716_v59, -inf }
 0x332   : > { %723 = vmax.xlane.f32.xlu0 %v722_v60 }
 0x338   : > { %v719_v61 = vpop.f32.mrf.mxu0 }
 0x339   : > { %v725_v62 = vsel %vm464_vm1, %v719_v61, -inf }
 0x33a   : > { %726 = vmax.xlane.f32.xlu0 %v725_v62 }
 0x342   : > { %856 = vmax.xlane.f32.xlu0 %v855_v1 }
 0x34a   : > { %859 = vmax.xlane.f32.xlu0 %v858_v6 }
 0x352   : > { %602 = vadd.xlane.f32.xlu0 %v601_v10 }
 0x35a   : > { %605 = vadd.xlane.f32.xlu0 %v604_v12 }
 0x3a5   : > { %v724_v13 = vpop.xlane.xlu0 %723 }
 0x3a6   : > { %v728_v14 = vsub.f32 %v716_v59, %v724_v13 }
 0x3a8   : > { %v730_v15 = vmul.f32 1.442695, %v728_v14 }
 0x3aa   : > { %1159 = vpow2.f32 %v730_v15 }
 0x3ad   : > { %v727_v17 = vpop.xlane.xlu0 %726 }
 0x3ae   : > { %v729_v18 = vsub.f32 %v719_v61, %v727_v17 }
 0x3b0   : > { %v1160_v19 = vpop.eup %1159  ;;  %v732_v20 = vmul.f32 1.442695, %v729_v18 }
 0x3b1   : > { %v734_v21 = vsel %vm464_vm1, %v1160_v19, 0.0 }
 0x3b2   : > { %1161 = vpow2.f32 %v732_v20  ;;  %735 = vadd.xlane.f32.xlu0 %v734_v21 }
 0x3b5   : > { %v857_v22 = vpop.xlane.xlu0 %856 }
 0x3b6   : > { %v861_v23 = vsub.f32 %v849_v63, %v857_v22 }
 0x3b8   : > { %v1162_v24 = vpop.eup %1161  ;;  %v863_v25 = vmul.f32 1.442695, %v861_v23 }
 0x3b9   : > { %v737_v26 = vsel %vm464_vm1, %v1162_v24, 0.0 }
 0x3ba   : > { %1163 = vpow2.f32 %v863_v25  ;;  %738 = vadd.xlane.f32.xlu0 %v737_v26 }
 0x3bd   : > { %v860_v27 = vpop.xlane.xlu0 %859 }
 0x3be   : > { %v862_v28 = vsub.f32 %v852_v4, %v860_v27 }
 0x3c0   : > { %v1164_v29 = vpop.eup %1163  ;;  %v865_v30 = vmul.f32 1.442695, %v862_v28 }
 0x3c1   : > { %v867_v31 = vsel %vm464_vm1, %v1164_v29, 0.0 }
 0x3c2   : > { %1165 = vpow2.f32 %v865_v30  ;;  %868 = vadd.xlane.f32.xlu1 %v867_v31 }
 0x3c5   : > { %v603_v32 = vpop.xlane.xlu0 %602 }
 0x3c6   : > { %1167 = vrcp.f32 %v603_v32 }
 0x3c8   : > { %v1166_v33 = vpop.eup %1165 }
 0x3c9   : > { %v870_v34 = vsel %vm464_vm1, %v1166_v33, 0.0 }
 0x3ca   : > { %871 = vadd.xlane.f32.xlu1 %v870_v34 }
 0x3cc   : > { %v1168_v35 = vpop.eup %1167 }
 0x3cd   : > { %v606_v36 = vpop.xlane.xlu0 %605  ;;  %v609_v37 = vmul.f32 %v1168_v35, %v1156_v9 }
 0x3ce   : > { %1169 = vrcp.f32 %v606_v36 }
 0x3cf   : > { %1082 = vmatmul.msk.f32.vlgmr.msra.gmra.mxu3 %vm464_vm1, %v609_v37 }
 0x3d4   : > { %v1170_v38 = vpop.eup %1169 }
 0x3d5   : > { %v610_v39 = vmul.f32 %v1170_v38, %v1158_v11 }
 0x3d7   : > { %1083 = vmatmul.msk.f32.gmra.mxu3 %vm464_vm1, %v610_v39 }
 0x425   : > { %v736_v42 = vpop.xlane.xlu0 %735 }
 0x426   : > { %1171 = vrcp.f32 %v736_v42 }
 0x42c   : > { %v1172_v43 = vpop.eup %1171 }
 0x42d   : > { %v739_v44 = vpop.xlane.xlu0 %738  ;;  %v742_v45 = vmul.f32 %v1172_v43, %v1160_v19 }
 0x42e   : > { %1173 = vrcp.f32 %v739_v44 }
 0x42f   : > { %1090 = vmatmul.msk.f32.vlgmr.msrb.gmra.mxu2 %vm464_vm1, %v742_v45 }
 0x434   : > { %v1174_v46 = vpop.eup %1173 }
 0x435   : > { %v869_v47 = vpop.xlane.xlu1 %868  ;;  %v743_v48 = vmul.f32 %v1174_v46, %v1162_v24 }
 0x436   : > { %1175 = vrcp.f32 %v869_v47 }
 0x437   : > { %1091 = vmatmul.msk.f32.gmra.mxu2 %vm464_vm1, %v743_v48 }
 0x43c   : > { %v1176_v49 = vpop.eup %1175 }
 0x43d   : > { %v872_v50 = vpop.xlane.xlu1 %871  ;;  %v875_v51 = vmul.f32 %v1176_v49, %v1164_v29 }
 0x43e   : > { %1177 = vrcp.f32 %v872_v50 }
 0x43f   : > { %1098 = vmatmul.msk.f32.vlgmr.msrb.gmra.mxu3 %vm464_vm1, %v875_v51 }
 0x444   : > { %v1178_v52 = vpop.eup %1177 }
 0x445   : > { %v876_v53 = vmul.f32 %v1178_v52, %v1166_v33 }
 0x447   : > { %1099 = vmatmul.msk.f32.gmra.mxu3 %vm464_vm1, %v876_v53 }
 0x452   : > { %v637_v54 = vpop.f32.mrf.mxu3 }
 0x453   : > { %645 = vrot.lane.b32.xlu2 %v637_v54, %s1219_s14 }
 0x45a   : > { %v640_v55 = vpop.f32.mrf.mxu3 }
 0x45b   : > { %647 = vrot.lane.b32.xlu0 %v640_v55, %s1219_s14 }
 0x4ad   : > { %v646_v56 = vpop.permute.xlu2 %645 }
 0x4ae   : > { %652 = vst.msk [vmem:[%s1350_s30] sm:$0xff] %vm651_vm2, %v646_v56 }
 0x4b2   : > { %v770_v57 = vpop.f32.mrf.mxu2 }
 0x4b3   : > { %778 = vrot.lane.b32.xlu1 %v770_v57, %s1220_s4 }
 0x4ba   : > { %v773_v58 = vpop.f32.mrf.mxu2 }
 0x4bb   : > { %780 = vrot.lane.b32.xlu2 %v773_v58, %s1220_s4 }
 0x4c2   : > { %v903_v59 = vpop.f32.mrf.mxu3 }
 0x4c3   : > { %911 = vrot.lane.b32.xlu0 %v903_v59, %s1221_s5 }
 0x4ca   : > { %v906_v60 = vpop.f32.mrf.mxu3 }
 0x4cb   : > { %913 = vrot.lane.b32.xlu2 %v906_v60, %s1221_s5 }
 0x4cd   : > { %v648_v61 = vpop.permute.xlu0 %647 }
 0x4ce   : > { %653 = vst.msk [vmem:[%s1350_s30 + $0x8] sm:$0xff] %vm651_vm2, %v648_v61 }
 0x515   : > { %v781_v62 = vpop.permute.xlu2 %780 }
 0x516   : > { %786 = vst.msk [vmem:[%s1350_s30 + $0x8] sm:$0xff] %vm784_vm3, %v781_v62 }
 0x525   : > { %v914_v63 = vpop.permute.xlu2 %913  ;;  %v779_v0 = vpop.permute.xlu1 %778 }
 0x526   : > { %919 = vst.msk [vmem:[%s1350_s30 + $0x8] sm:$0xff] %vm917_vm4, %v914_v63 }
 0x527   : > { %785 = vst.msk [vmem:[%s1350_s30] sm:$0xff] %vm784_vm3, %v779_v0 }
 0x535   : > { %v912_v1 = vpop.permute.xlu0 %911 }
 0x536   : > { %918 = vst.msk [vmem:[%s1350_s30] sm:$0xff] %vm917_vm4, %v912_v1 }
 0x537 PF: > { %s13_s16 = sadd.s32 1, %s1217_s16   ;;  %s1404_s12 = smov %s1205_s13 }
 0x538   : > { %p10_p10 = scmp.ge.s32.totalorder %s13_s16, 4   ;;  %s1405_s13 = smov %s1281_s21 }
 0x539   : > { %s1406_s14 = smov %s1213_s15  ;;  %s1407_s15 = smov %s1409_s17 }
 0x53a   :  { %12 = sbr.rel (!%p10_p10) target bundleno = 3 (0x3), region = 206 }

</bundles_post_ra>
